<compile_context>
chip_gen: v7x
topology: tpu7x:2x2x1
jax: 0.10.0
libtpu: 0.0.40
codegen_flags: <defaults>
</compile_context>

<pallas_src>
import jax
import jax.numpy as jnp
from jax.experimental import pallas as pl
from jax.experimental.pallas import tpu as pltpu

HIDDEN = 128
SUBLANE = 8                # f32 sublane count: pad batch rows to this (small path)
MAX_SINGLE_BLOCK_B = 1024  # at/below this, run grid-less (single VMEM block)
BATCH_TILE = 4096          # batch tile for the gridded (large-batch) path


def dqn_kernel(x_ref, w1_ref, b1_ref, w2_ref, b2_ref, o_ref):
    # layer 1: x @ w1 + b1, then ReLU (MXU matmul, f32 accumulate; VPU epilogue)
    h = jnp.dot(x_ref[...], w1_ref[...], preferred_element_type=jnp.float32)
    h = jnp.maximum(h + b1_ref[...], 0.0)          # b1 is [1, 128], broadcasts
    # layer 2: h @ w2 + b2 (output kept at n_act lanes -> minimal HBM writeback)
    q = jnp.dot(h, w2_ref[...], preferred_element_type=jnp.float32)
    o_ref[...] = (q + b2_ref[...]).astype(o_ref.dtype)


def _round_up(x, m):
    return (x + m - 1) // m * m


def _gridded_vmem_bytes(tb, n_obs, hidden, n_act):
    f32 = 4
    tiles = 2 * tb * n_obs * f32 + 2 * tb * n_act * f32          # double-buffered x / out tiles
    weights = 2 * (n_obs * hidden + hidden + hidden * n_act + n_act) * f32
    interm = 2 * tb * hidden * f32                               # h / q intermediates
    return tiles + weights + interm


def dqn_forward(x, w1, b1, w2, b2):
    """Fused DQN forward: relu(x @ w1 + b1) @ w2 + b2.

    x:  [B, n_obs]   f32
    w1: [n_obs, 128], b1: [1, 128]   (transposed vs. PyTorch nn.Linear)
    w2: [128, n_act], b2: [1, n_act]
    returns [B, n_act] f32
    """
    B, n_obs = x.shape
    hidden = w1.shape[1]
    n_act = w2.shape[1]

    if B <= MAX_SINGLE_BLOCK_B:
        # Small batch (action selection): no grid, no pipeline machinery.
        # Whole operands are single VMEM blocks; only pad the batch rows to the
        # f32 sublane multiple when strictly necessary.
        B_p = _round_up(max(B, 1), SUBLANE)
        x_p = x if B_p == B else jnp.zeros((B_p, n_obs), x.dtype).at[:B].set(x)
        vmem = pl.BlockSpec(memory_space=pltpu.MemorySpace.VMEM)
        out = pl.pallas_call(
            dqn_kernel,
            out_shape=jax.ShapeDtypeStruct((B_p, n_act), jnp.float32),
            in_specs=[vmem] * 5,
            out_specs=vmem,
        )(x_p, w1, b1, w2, b2)
        return out if B_p == B else out[:B]

    # Large batch (replay-buffer training): tile the batch axis over the
    # ORIGINAL x (no zero-pad copy). Rows are independent, so garbage rows read
    # by the ragged last tile only feed output rows that Pallas masks off on
    # the store. Weights/biases use constant index_maps so they stay
    # VMEM-resident across steps; the batch axis is 'parallel' so v7x shards
    # steps across both TensorCores (neutral on v5e/v6e).
    TB = BATCH_TILE
    if pl.cdiv(B, TB) < 2:
        # Guarantee >=2 grid steps so megacore parallelism has work to split.
        TB = max(SUBLANE, _round_up(pl.cdiv(B, 2), SUBLANE))
    n_steps = pl.cdiv(B, TB)

    flops = 2 * B * (n_obs * hidden + hidden * n_act)
    bytes_accessed = 4 * (B * n_obs + B * n_act
                          + n_obs * hidden + hidden + hidden * n_act + n_act)
    vmem_budget = _gridded_vmem_bytes(TB, n_obs, hidden, n_act)
    vmem_limit = min(64 << 20, max(32 << 20, vmem_budget + (8 << 20)))

    out = pl.pallas_call(
        dqn_kernel,
        out_shape=jax.ShapeDtypeStruct((B, n_act), jnp.float32),
        grid_spec=pl.GridSpec(
            grid=(n_steps,),
            in_specs=[
                pl.BlockSpec((TB, n_obs), lambda i: (i, 0)),
                pl.BlockSpec((n_obs, hidden), lambda i: (0, 0)),
                pl.BlockSpec((1, hidden), lambda i: (0, 0)),
                pl.BlockSpec((hidden, n_act), lambda i: (0, 0)),
                pl.BlockSpec((1, n_act), lambda i: (0, 0)),
            ],
            out_specs=pl.BlockSpec((TB, n_act), lambda i: (i, 0)),
        ),
        compiler_params=pltpu.CompilerParams(
            dimension_semantics=("parallel",),
            vmem_limit_bytes=vmem_limit,
        ),
        cost_estimate=pl.CostEstimate(
            flops=flops, transcendentals=0, bytes_accessed=bytes_accessed),
    )(x, w1, b1, w2, b2)
    return out


def init_params(key, n_obs, n_act, hidden=HIDDEN):
    # Deterministic synthetic init (PyTorch-style uniform fan-in bound).
    k1, k2, k3, k4 = jax.random.split(key, 4)
    bound1 = 1.0 / jnp.sqrt(n_obs)
    bound2 = 1.0 / jnp.sqrt(hidden)
    w1 = jax.random.uniform(k1, (n_obs, hidden), jnp.float32, -bound1, bound1)
    b1 = jax.random.uniform(k2, (1, hidden), jnp.float32, -bound1, bound1)
    w2 = jax.random.uniform(k3, (hidden, n_act), jnp.float32, -bound2, bound2)
    b2 = jax.random.uniform(k4, (1, n_act), jnp.float32, -bound2, bound2)
    return w1, b1, w2, b2


if __name__ == "__main__":
    n_obs, n_act = 16, 8
    key = jax.random.PRNGKey(0)
    kx, kp, kx2 = jax.random.split(key, 3)
    w1, b1, w2, b2 = init_params(kp, n_obs, n_act)

    def ref_fn(xx):
        return jnp.maximum(xx @ w1 + b1, 0.0) @ w2 + b2

    # Small-batch path (grid-less, single VMEM block; B not a multiple of 8).
    batch = 4
    x = jax.random.normal(kx, (batch, n_obs), jnp.float32)
    out = dqn_forward(x, w1, b1, w2, b2)
    jax.block_until_ready(out)
    assert out.shape == (batch, n_act)
    assert jnp.allclose(out, ref_fn(x), atol=1e-4, rtol=1e-4)

    # Batch-tiled path (>=2 parallel grid steps, ragged last tile handled by
    # Pallas store masking — no wrapper pad or slice).
    batch_big = 1030
    x_big = jax.random.normal(kx2, (batch_big, n_obs), jnp.float32)
    out_big = dqn_forward(x_big, w1, b1, w2, b2)
    jax.block_until_ready(out_big)
    assert out_big.shape == (batch_big, n_act)
    assert jnp.allclose(out_big, ref_fn(x_big), atol=1e-4, rtol=1e-4)

    print("KERNEL_OK")
</pallas_src>

<mosaic_0001>
module attributes {stable_mosaic.version = 11 : i64} {
  func.func @dqn_kernel(%arg0: memref<8x16xf32, #tpu.memory_space<vmem>>, %arg1: memref<16x128xf32, #tpu.memory_space<vmem>>, %arg2: memref<1x128xf32, #tpu.memory_space<vmem>>, %arg3: memref<128x8xf32, #tpu.memory_space<vmem>>, %arg4: memref<1x8xf32, #tpu.memory_space<vmem>>, %arg5: memref<8x8xf32, #tpu.memory_space<vmem>>) attributes {dimension_semantics = [], scalar_prefetch = 0 : i64, scratch_operands = 0 : i64, tpu.core_type = #tpu.core_type<tc>} {
    %c0 = arith.constant 0 : index
    %c0_0 = arith.constant 0 : index
    %0 = vector.load %arg0[%c0, %c0_0] : memref<8x16xf32, #tpu.memory_space<vmem>>, vector<8x16xf32>
    %c0_1 = arith.constant 0 : index
    %c0_2 = arith.constant 0 : index
    %1 = vector.load %arg1[%c0_1, %c0_2] : memref<16x128xf32, #tpu.memory_space<vmem>>, vector<16x128xf32>
    %cst = arith.constant dense<0.000000e+00> : vector<8x128xf32>
    %2 = tpu.matmul %0, %1, %cst {dimension_numbers = #tpu.dot_dimension_numbers<[1], [0], [0], [1], [0, 0, 1, 1], [], []>} : vector<8x16xf32>, vector<16x128xf32>, vector<8x128xf32> -> vector<8x128xf32>
    %c0_3 = arith.constant 0 : index
    %c0_4 = arith.constant 0 : index
    %3 = vector.load %arg2[%c0_3, %c0_4] : memref<1x128xf32, #tpu.memory_space<vmem>>, vector<1x128xf32>
    %4 = vector.broadcast %3 : vector<1x128xf32> to vector<8x128xf32>
    %5 = arith.addf %2, %4 : vector<8x128xf32>
    %cst_5 = arith.constant 0.000000e+00 : f32
    %6 = vector.broadcast %cst_5 : f32 to vector<8x128xf32>
    %7 = arith.maximumf %5, %6 : vector<8x128xf32>
    %c0_6 = arith.constant 0 : index
    %c0_7 = arith.constant 0 : index
    %8 = vector.load %arg3[%c0_6, %c0_7] : memref<128x8xf32, #tpu.memory_space<vmem>>, vector<128x8xf32>
    %cst_8 = arith.constant dense<0.000000e+00> : vector<8x8xf32>
    %9 = tpu.matmul %7, %8, %cst_8 {dimension_numbers = #tpu.dot_dimension_numbers<[1], [0], [0], [1], [0, 0, 1, 1], [], []>} : vector<8x128xf32>, vector<128x8xf32>, vector<8x8xf32> -> vector<8x8xf32>
    %c0_9 = arith.constant 0 : index
    %c0_10 = arith.constant 0 : index
    %10 = vector.load %arg4[%c0_9, %c0_10] : memref<1x8xf32, #tpu.memory_space<vmem>>, vector<1x8xf32>
    %11 = vector.broadcast %10 : vector<1x8xf32> to vector<8x8xf32>
    %12 = arith.addf %9, %11 : vector<8x8xf32>
    %c0_11 = arith.constant 0 : index
    %c0_12 = arith.constant 0 : index
    %13 = vector.load %arg5[%c0_11, %c0_12] : memref<8x8xf32, #tpu.memory_space<vmem>>, vector<8x8xf32>
    tpu.vector_store %arg5[%c0_11, %c0_12], %12 {strides = array<i32>} : memref<8x8xf32, #tpu.memory_space<vmem>>, vector<8x8xf32>,
    return
  }
}

</mosaic_0001>

<bundles_post_ra>
// kernel: tpu_custom_call.1
= control target key start
LH: loop header
LB: loop body
LE: loop exit
PB: predicated region body
PF: predicated region fallthrough
CT: control target
= control target key end

     0   :  { %v335_v2 = vmov 0.0|0.0   ;;  %vm336_vm0 = vmmov 0   ;;  %v337_v4 = vmov 0.0   ;;  %vm31_vm1 = vcmask 130048   ;;  %s444_s0 = inlined_call_operand.vmem [shape: f32[8,16], index: 0, kind: input, shape index: {}]   ;;  %s445_s1 = inlined_call_operand.vmem [shape: f32[16,128], index: 1, kind: input, shape index: {}]   ;;  %s446_s2 = inlined_call_operand.vmem [shape: f32[1,128], index: 2, kind: input, shape index: {}]   ;;  %s447_s3 = inlined_call_operand.vmem [shape: f32[128,8], index: 3, kind: input, shape index: {}]   ;;  %s448_s4 = inlined_call_operand.vmem [shape: f32[1,8], index: 4, kind: input, shape index: {}]   ;;  %s449_s5 = inlined_call_operand.hbm [shape: f32[8,8], index: 5, kind: output, shape index: {}]  }
   0x1   :  { %v22_v0 = vld [vmem:[%s445_s1] sm:$0xff]  ;;  %v23_v1 = vld [vmem:[%s445_s1 + $0x8] sm:$0xff]  ;;  %280 = vmatprep.subr.bf16.mxu0 %v335_v2  ;;  %242 = vmatprep.mubr.msk.f32.mxu0 %vm336_vm0, %v337_v4  ;;  %v108_v7 = vld [vmem:[%s447_s3 + $0x10] sm:$0xff] }
   0x2   :  { %v281_v3 = vpack.c.bf16 %v23_v1, %v22_v0  ;;  %v106_v5 = vld [vmem:[%s447_s3] sm:$0xff]  ;;  %v107_v6 = vld [vmem:[%s447_s3 + $0x8] sm:$0xff]  ;;  %283 = vmatprep.subr.bf16.mxu1 %v335_v2  ;;  %v109_v9 = vld [vmem:[%s447_s3 + $0x18] sm:$0xff]  ;;  %277 = vmatprep.mubr.msk.f32.mxu1 %vm336_vm0, %v337_v4 }
   0x3   :  { %v284_v8 = vpack.c.bf16 %v107_v6, %v106_v5  ;;  %v21_v10 = vld [vmem:[%s444_s0] sm:$0xff]  ;;  %v287_v11 = vpack.c.bf16 %v109_v9, %v108_v7  ;;  %v111_v13 = vld [vmem:[%s447_s3 + $0x28] sm:$0xff] }
   0x4   :  { %282 = vmatpush3.bf16.msra.mxu0 %v281_v3  ;;  %v110_v12 = vld [vmem:[%s447_s3 + $0x20] sm:$0xff] }
   0x5   :  { %285 = vmatpush3.bf16.msra.mxu1 %v284_v8 }
   0x6   :  { %286 = vmatprep.subr.bf16.mxu1 %v335_v2 }
   0x7   :  { %243 = vmatmul.mubr.msk.f32.vlgmr.msra.gmra.mrb[0].mxu0 %vm31_vm1, %v21_v10 }
   0x8   :  { %10 = vsyncpa [#allocation3], 0  ;;  %v290_v14 = vpack.c.bf16 %v111_v13, %v110_v12  ;;  %v112_v15 = vld [vmem:[%s447_s3 + $0x30] sm:$0xff]  ;;  %v113_v16 = vld [vmem:[%s447_s3 + $0x38] sm:$0xff]  ;;  %s338_s7 = smov [#allocation2]   ;;  %vm199_vm2 = vcmask 64512  }
   0x9   :  { %288 = vmatpush3.bf16.msra.mxu1 %v287_v11  ;;  %v293_v17 = vpack.c.bf16 %v113_v16, %v112_v15  ;;  %v114_v18 = vld [vmem:[%s447_s3 + $0x40] sm:$0xff]  ;;  %v115_v19 = vld [vmem:[%s447_s3 + $0x48] sm:$0xff]  ;;  %v116_v21 = vld [vmem:[%s447_s3 + $0x50] sm:$0xff]  ;;  %s207_s8 = sshll.u32 %s338_s7, 4  ;;  %s208_s8 = int_to_ptr.vmem [resolvable:$true] %s207_s8 }
   0xa   :  { %289 = vmatprep.subr.bf16.mxu1 %v335_v2  ;;  %v296_v20 = vpack.c.bf16 %v115_v19, %v114_v18  ;;  %v117_v22 = vld [vmem:[%s447_s3 + $0x58] sm:$0xff]  ;;  %v118_v24 = vld [vmem:[%s447_s3 + $0x60] sm:$0xff]  ;;  %v119_v25 = vld [vmem:[%s447_s3 + $0x68] sm:$0xff]  ;;  %p316_p1 = scmp.lt.s32.totalorder %s208_s8, %s208_s8 }
   0xb   :  { %v299_v23 = vpack.c.bf16 %v117_v22, %v116_v21  ;;  %v302_v26 = vpack.c.bf16 %v119_v25, %v118_v24  ;;  %v120_v27 = vld [vmem:[%s447_s3 + $0x70] sm:$0xff]  ;;  %v121_v28 = vld [vmem:[%s447_s3 + $0x78] sm:$0xff]  ;;  %v215_v30 = vld [vmem:[%s446_s2] ss:$0 sm:$0xff]  ;;  %s311_s3 = scalar_lea.vmem %s208_s8, 128 }
   0xc   :  { %v305_v29 = vpack.c.bf16 %v121_v28, %v120_v27  ;;  %v217_v35 = vld [vmem:[%s448_s4] ss:$0 sm:$0xff]  ;;  %p312_p0 = scmp.ne.s32.totalorder %s208_s8, %s311_s3  ;;  %p317_p2 = scmp.lt.s32.totalorder %s311_s3, %s311_s3 }
   0xd   :  { %291 = vmatpush3.bf16.msra.mxu1 %v290_v14 }
   0xe   :  { %292 = vmatprep.subr.bf16.mxu1 %v335_v2  ;;  %p318_p3 = por %p317_p2, %p316_p1 }
  0x10   :  { %p319_p4 = pnand %p318_p3, %p312_p0 }
  0x11   :  { %294 = vmatpush3.bf16.msra.mxu1 %v293_v17 }
  0x12   :  { %295 = vmatprep.subr.bf16.mxu1 %v335_v2 }
  0x15   :  { %297 = vmatpush3.bf16.msra.mxu1 %v296_v20 }
  0x16   :  { %298 = vmatprep.subr.bf16.mxu1 %v335_v2 }
  0x19   :  { %300 = vmatpush3.bf16.msra.mxu1 %v299_v23 }
  0x1a   :  { %301 = vmatprep.subr.bf16.mxu1 %v335_v2 }
  0x1d   :  { %303 = vmatpush3.bf16.msra.mxu1 %v302_v26 }
  0x1e   :  { %304 = vmatprep.subr.bf16.mxu1 %v335_v2 }
  0x21   :  { %306 = vmatpush3.bf16.msra.mxu1 %v305_v29 }
  0xda   :  { %v101_v31 = vpop.f32.mrb[0].mxu0 }
  0xdb   :  { %v102_v32 = vadd.f32 %v215_v30, %v101_v31  ;;  %v244_v33 = vpop.f32.mrb[1].mxu0 }
  0xdd   :  { %v105_v34 = vmax.f32 %v102_v32, 0.0 }
  0xdf   :  { %278 = vmatmul.mubr.f32.vlgmr.msra.gmra.mrb[0].mxu1 %v105_v34 }
 0x1b2   :  { %v195_v36 = vpop.f32.mrb[0].mxu1 }
 0x1b3   :  { %v196_v37 = vadd.f32 %v217_v35, %v195_v36  ;;  %v279_v38 = vpop.f32.mrb[1].mxu1 }
 0x1b5   :  { %200 = vst.msk [vmem:[#allocation2] sm:$0xff] %vm199_vm2, %v196_v37 }
 0x1b6   :  { %322 = shalt.err (!%p319_p4)
}
 0x1b7   :  { %s323_s10 = scalar_lea.hbm %s449_s5, 128 }
 0x1b8   :  { %p324_p5 = scmp.ne.s32.totalorder %s449_s5, %s323_s10  ;;  %p327_p6 = scmp.lt.u32.totalorder %s323_s10, %s449_s5 }
 0x1ba   :  { %p329_p7 = pnand %p327_p6, %p324_p5 }
 0x1bc   :  { %332 = shalt.err (!%p329_p7)
}
 0x1bd   :  { %210 = dma.vmem_to_hbm [thread:$0]  %s208_s8, 128, %s449_s5, [#allocation3]  }
 0x1be   :  { %333 = dma.done.wait [#allocation3], 128  }
 0x1bf   :  { %334 = vsyncadd [#allocation3], 4294967168 }
 0x1c0   :  { %214 = vsyncpa [#allocation3], 1 }

</bundles_post_ra>
